<compile_context>
chip_gen: v7x
topology: tpu7x:2x2x1
jax: 0.10.0
libtpu: 0.0.40
codegen_flags: <defaults>
</compile_context>

<pallas_src>
import jax
import jax.numpy as jnp
from jax.experimental import pallas as pl
from jax.experimental.pallas import tpu as pltpu


# ---------------------------------------------------------------------------
# Pallas kernel: fused (patches @ W) + bias for one M-tile.
# ---------------------------------------------------------------------------
def _patch_proj_kernel(x_ref, w_ref, b_ref, o_ref):
    # x_ref: (TM, K)   w_ref: (K, Cout)   b_ref: (1, Cout)   o_ref: (TM, Cout)
    y = jnp.dot(x_ref[...], w_ref[...], preferred_element_type=jnp.float32)
    o_ref[...] = (y + b_ref[...]).astype(o_ref.dtype)


def _choose_tm(m, cap=512):
    """M-tile: 8-aligned (sublane rule), >=2 tiles when cheaply possible."""
    if m <= cap:
        if m % 16 == 0 and m >= 16:
            return m // 2          # 2 tiles -> megacore can split on v7x
        return m                   # full dim (always legal)
    return cap                     # 512 is a multiple of 8; last tile masked


def _patch_proj(patches, w_mat, b_mat, *, tm_cap=512):
    M, K = patches.shape
    Cout = w_mat.shape[1]
    tm = _choose_tm(M, tm_cap)
    grid = (pl.cdiv(M, tm),)

    cost = pl.CostEstimate(
        flops=2 * M * K * Cout,
        transcendentals=0,
        bytes_accessed=4 * (M * K + K * Cout + Cout + M * Cout),
    )
    return pl.pallas_call(
        _patch_proj_kernel,
        out_shape=jax.ShapeDtypeStruct((M, Cout), patches.dtype),
        grid_spec=pltpu.PrefetchScalarGridSpec(
            num_scalar_prefetch=0,
            grid=grid,
            in_specs=[
                pl.BlockSpec((tm, K), lambda i: (i, 0)),     # activation tile
                pl.BlockSpec((K, Cout), lambda i: (0, 0)),   # weight (resident)
                pl.BlockSpec((1, Cout), lambda i: (0, 0)),   # bias (resident)
            ],
            out_specs=pl.BlockSpec((tm, Cout), lambda i: (i, 0)),
        ),
        compiler_params=pltpu.CompilerParams(
            dimension_semantics=("parallel",),
            vmem_limit_bytes=64 * 1024 * 1024,
        ),
        cost_estimate=cost,
    )(patches, w_mat, b_mat)


# ---------------------------------------------------------------------------
# PatchEmbed forward (Pallas) -- NCHW in, NCHW out (norm_layer=None -> Identity)
# ---------------------------------------------------------------------------
def patch_embed_forward(x_nchw, w_oihw, bias, patch):
    # TODO(synk): norm_layer argument of PatchEmbed not supported; default
    # norm_layer=None (Identity) is implemented, which matches the spec default.
    B, Cin, H, W = x_nchw.shape
    Cout = w_oihw.shape[0]
    ph = (-H) % patch
    pw = (-W) % patch

    x = jnp.transpose(x_nchw, (0, 2, 3, 1))                 # NCHW -> NHWC
    if ph or pw:
        x = jnp.pad(x, ((0, 0), (0, ph), (0, pw), (0, 0)))   # F.pad right/bottom
    Hp, Wp = H + ph, W + pw
    Ho, Wo = Hp // patch, Wp // patch
    K = patch * patch * Cin

    # Non-overlapping im2col: (B,Ho,P,Wo,P,Cin) -> (B*Ho*Wo, P*P*Cin)
    patches = x.reshape(B, Ho, patch, Wo, patch, Cin)
    patches = jnp.transpose(patches, (0, 1, 3, 2, 4, 5)).reshape(B * Ho * Wo, K)

    # PyTorch Conv2d weight (Cout,Cin,kh,kw) -> (kh,kw,Cin,Cout) -> (K,Cout),
    # matching the (dy, dx, cin) flatten order of the patches (cross-correlation).
    w_mat = jnp.transpose(w_oihw, (2, 3, 1, 0)).reshape(K, Cout)
    b_mat = bias.reshape(1, Cout)

    y = _patch_proj(patches, w_mat, b_mat)                   # (M, Cout)

    # flatten(2).transpose(1,2) -> Identity norm -> view -> permute == NCHW conv out
    y = y.reshape(B, Ho, Wo, Cout)
    return jnp.transpose(y, (0, 3, 1, 2))                    # NHWC -> NCHW


# ---------------------------------------------------------------------------
# Pure-JAX reference (for correctness check)
# ---------------------------------------------------------------------------
def ref_forward(x_nchw, w_oihw, bias, patch):
    B, C, H, W = x_nchw.shape
    ph = (-H) % patch
    pw = (-W) % patch
    xp = jnp.pad(x_nchw, ((0, 0), (0, 0), (0, ph), (0, pw)))
    y = jax.lax.conv_general_dilated(
        xp, w_oihw, (patch, patch), "VALID",
        dimension_numbers=("NCHW", "OIHW", "NCHW"))
    return y + bias.reshape(1, -1, 1, 1)


# ---------------------------------------------------------------------------
if __name__ == "__main__":
    key = jax.random.PRNGKey(0)
    in_c, embed_dim, patch = 3, 96, 4
    B, H, W = 2, 30, 29          # not multiples of 4 -> exercises the pad path

    k1, k2, k3 = jax.random.split(key, 3)
    x = jax.random.normal(k1, (B, in_c, H, W), jnp.float32)
    fan_in = in_c * patch * patch
    w = jax.random.normal(k2, (embed_dim, in_c, patch, patch), jnp.float32) / jnp.sqrt(fan_in)
    b = 0.02 * jax.random.normal(k3, (embed_dim,), jnp.float32)

    fwd = jax.jit(lambda xi: patch_embed_forward(xi, w, b, patch))
    out = jax.block_until_ready(fwd(x))

    Ho = (H + (-H) % patch) // patch
    Wo = (W + (-W) % patch) // patch
    assert out.shape == (B, embed_dim, Ho, Wo), out.shape

    ref = ref_forward(x, w, b, patch)
    max_err = float(jnp.max(jnp.abs(out - ref)))
    assert jnp.isfinite(out).all()
    assert max_err < 1e-4, f"mismatch vs reference: {max_err}"
    print("KERNEL_OK")
</pallas_src>

<mosaic_0001>
module attributes {stable_mosaic.version = 11 : i64} {
  func.func @_patch_proj_kernel(%arg0: i32, %arg1: memref<64x48xf32, #tpu.memory_space<vmem>>, %arg2: memref<48x96xf32, #tpu.memory_space<vmem>>, %arg3: memref<1x96xf32, #tpu.memory_space<vmem>>, %arg4: memref<64x96xf32, #tpu.memory_space<vmem>>) attributes {dimension_semantics = [#tpu.dimension_semantics<parallel>], iteration_bounds = array<i64: 2>, scalar_prefetch = 0 : i64, scratch_operands = 0 : i64, tpu.core_type = #tpu.core_type<tc>, window_params = [{transform_indices = @transform_0, window_bounds = array<i64: 64, 48>}, {pipeline_mode = #tpu.pipeline_mode<synchronous>, transform_indices = @transform_1, window_bounds = array<i64: 48, 96>}, {pipeline_mode = #tpu.pipeline_mode<synchronous>, transform_indices = @transform_2, window_bounds = array<i64: 1, 96>}, {transform_indices = @transform_3, window_bounds = array<i64: 64, 96>}]} {
    %c0 = arith.constant 0 : index
    %c0_0 = arith.constant 0 : index
    %0 = vector.load %arg1[%c0, %c0_0] : memref<64x48xf32, #tpu.memory_space<vmem>>, vector<64x48xf32>
    %c0_1 = arith.constant 0 : index
    %c0_2 = arith.constant 0 : index
    %1 = vector.load %arg2[%c0_1, %c0_2] : memref<48x96xf32, #tpu.memory_space<vmem>>, vector<48x96xf32>
    %cst = arith.constant dense<0.000000e+00> : vector<64x96xf32>
    %2 = tpu.matmul %0, %1, %cst {dimension_numbers = #tpu.dot_dimension_numbers<[1], [0], [0], [1], [0, 0, 1, 1], [], []>} : vector<64x48xf32>, vector<48x96xf32>, vector<64x96xf32> -> vector<64x96xf32>
    %c0_3 = arith.constant 0 : index
    %c0_4 = arith.constant 0 : index
    %3 = vector.load %arg3[%c0_3, %c0_4] : memref<1x96xf32, #tpu.memory_space<vmem>>, vector<1x96xf32>
    %4 = vector.broadcast %3 : vector<1x96xf32> to vector<64x96xf32>
    %5 = arith.addf %2, %4 : vector<64x96xf32>
    %c0_5 = arith.constant 0 : index
    %c0_6 = arith.constant 0 : index
    %6 = vector.load %arg4[%c0_5, %c0_6] : memref<64x96xf32, #tpu.memory_space<vmem>>, vector<64x96xf32>
    tpu.vector_store %arg4[%c0_5, %c0_6], %5 {strides = array<i32>} : memref<64x96xf32, #tpu.memory_space<vmem>>, vector<64x96xf32>,
    return
  }
  func.func @transform_0(%arg0: i32) -> (i32, i32) {
    %c0_i32 = arith.constant 0 : i32
    %c0_i32_0 = arith.constant 0 : i32
    return %arg0, %c0_i32 : i32, i32
  }
  func.func @transform_1(%arg0: i32) -> (i32, i32) {
    %c0_i32 = arith.constant 0 : i32
    %c0_i32_0 = arith.constant 0 : i32
    %c0_i32_1 = arith.constant 0 : i32
    return %c0_i32, %c0_i32_0 : i32, i32
  }
  func.func @transform_2(%arg0: i32) -> (i32, i32) {
    %c0_i32 = arith.constant 0 : i32
    %c0_i32_0 = arith.constant 0 : i32
    %c0_i32_1 = arith.constant 0 : i32
    return %c0_i32, %c0_i32_0 : i32, i32
  }
  func.func @transform_3(%arg0: i32) -> (i32, i32) {
    %c0_i32 = arith.constant 0 : i32
    %c0_i32_0 = arith.constant 0 : i32
    return %arg0, %c0_i32 : i32, i32
  }
}

</mosaic_0001>

<bundles_post_ra>
// kernel: _lambda_.1
= control target key start
LH: loop header
LB: loop body
LE: loop exit
PB: predicated region body
PF: predicated region fallthrough
CT: control target
= control target key end

     0   :  { %8 = vsyncpa [#allocation3], 0  ;;  %s1097_s0 = inlined_call_operand.hbm [shape: f32[128,48], index: 0, kind: input, shape index: {}]   ;;  %s1098_s1 = inlined_call_operand.hbm [shape: f32[48,96], index: 1, kind: input, shape index: {}]   ;;  %s1099_s2 = inlined_call_operand.hbm [shape: f32[1,96], index: 2, kind: input, shape index: {}]   ;;  %s1100_s3 = inlined_call_operand.hbm [shape: f32[128,96], index: 3, kind: output, shape index: {}]  }
   0x1   :  { %10 = vsyncpa [#allocation3 + $0x1], 0 }
   0x2   :  { %11 = vsyncpa [#allocation6], 0 }
   0x3   :  { %12 = vsyncpa [#allocation4], 0 }
   0x4   :  { %14 = vsyncpa [#allocation4 + $0x1], 0  ;;  %s826_s12 = smov 0   ;;  %s828_s13 = smov 0  }
   0x5   :  { %s830_s14 = smov 0   ;;  %s832_s15 = smov 0  }
   0x6 LB: > { %s847_s16 = sadd.s32 4294967295, %s796_s15   ;;  %s484_s17 = sadd.s32 4294967294, %s796_s15   ;;  %s796_s15 = sphi %s832_s15, %s1120_s15   ;;  %s792_s14 = sphi %s830_s14, %s1119_s14   ;;  %s788_s13 = sphi %s828_s13, %s1118_s13   ;;  %s784_s12 = sphi %s826_s12, %s1117_s12  }
   0x7   : > { %p40_p0 = scmp.ne.s32.totalorder %s788_s13, %s784_s12  ;;  %p1101_p1 = scmp.eq.s32.totalorder %s847_s16, 0 }
   0x8   : > { %p112_p3 = scmp.eq.s32.totalorder %s484_s17, 1  ;;  %p485_p5 = scmp.ge.s32.totalorder %s796_s15, 1 }
   0x9   : > { %p856_p4 = por %p1101_p1, %p40_p0  ;;  %p119_p7 = scmp.lt.s32.totalorder %s796_s15, 3 }
   0xa   : > { %p861_p6 = por %p112_p3, %p40_p0  ;;  %s798_s21 = smov [#allocation5]  }
   0xb   : > { %s1104_s18 = scalar_select %p856_p4, 1, 0 }
   0xc   : > { %s1105_s19 = scalar_select %p861_p6, 1, 0 }
   0xd   : > { %p866_p8 = pnand %p485_p5, %p119_p7  ;;  %s131_s22 = sshll.u32 %s798_s21, 4  ;;  %s870_s22 = int_to_ptr.vmem [resolvable:$true] %s131_s22 }
   0xe   : > { %s799_s24 = smov [#allocation7]   ;;  %s640_s28 = scalar_lea.hbm %s1098_s1, 768 }
   0xf   : > { %p581_p9 = pneg %p866_p8  ;;  %s145_s25 = sshll.u32 %s799_s24, 4  ;;  %s881_s25 = int_to_ptr.vmem [resolvable:$true] %s145_s25 }
  0x10   : > { %p641_p12 = scmp.ne.s32.totalorder %s1098_s1, %s640_s28  ;;  %p647_p5 = scmp.lt.u32.totalorder %s640_s28, %s1098_s1 }
  0x11   : > { %p877_p11 = pnand %p581_p9, %p1101_p1 }
  0x13   : > { %p642_p13 = pneg %p877_p11 }
  0x15   : > { %p643_p0 = pnand %p642_p13, %p641_p12 }
  0x17   : > { %p644_p3 = pneg %p643_p0 }
  0x19   : > { %p649_p7 = pnand %p647_p5, %p644_p3 }
  0x1b   : > { %652 = shalt.err (!%p649_p7)
}
  0x1c   : > { %s653_s6 = scalar_lea.vmem %s870_s22, 768  ;;  %p661_p2 = scmp.lt.s32.totalorder %s870_s22, %s870_s22 }
  0x1d   : > { %p654_p9 = scmp.ne.s32.totalorder %s870_s22, %s653_s6  ;;  %p662_p12 = scmp.lt.s32.totalorder %s653_s6, %s653_s6 }
  0x1f   : > { %p656_p10 = pnand %p654_p9, %p642_p13  ;;  %p663_p0 = por %p662_p12, %p661_p2 }
  0x21   : > { %p657_p1 = pneg %p656_p10 }
  0x23   : > { %p664_p6 = pnand %p663_p0, %p657_p1 }
  0x25   : > { %667 = shalt.err (!%p664_p6)
}
  0x26   : > { %s800_s7 = smov 128   ;;  %s801_s8 = smov 8  }
  0x27   : > { %584 = dma.hbm_to_vmem [thread:$0]  (!%p877_p11), %s1098_s1, 768, %s870_s22, [#allocation6], %s800_s7, %s800_s7, %s801_s8  }
  0x28   : > { %s668_s21 = scalar_lea.hbm %s1099_s2, 16 }
  0x29   : > { %p669_p1 = scmp.ne.s32.totalorder %s1099_s2, %s668_s21  ;;  %p675_p10 = scmp.lt.u32.totalorder %s668_s21, %s1099_s2 }
  0x2b   : > { %p671_p2 = pnand %p669_p1, %p642_p13 }
  0x2d   : > { %p672_p6 = pneg %p671_p2 }
  0x2f   : > { %p677_p3 = pnand %p675_p10, %p672_p6 }
  0x31   : > { %680 = shalt.err (!%p677_p3)
}
  0x32   : > { %s681_s22 = scalar_lea.vmem %s881_s25, 16  ;;  %s688_s29 = scalar_lea.vmem %s881_s25, 32 }
  0x33   : > { %p682_p5 = scmp.ne.s32.totalorder %s881_s25, %s681_s22  ;;  %p689_p12 = scmp.lt.s32.totalorder %s881_s25, %s881_s25 }
  0x34   : > { %p690_p0 = scmp.lt.s32.totalorder %s688_s29, %s681_s22 }
  0x35   : > { %p684_p7 = pnand %p682_p5, %p642_p13 }
  0x36   : > { %p691_p1 = por %p690_p0, %p689_p12 }
  0x37   : > { %p685_p9 = pneg %p684_p7 }
  0x39   : > { %p692_p2 = pnand %p691_p1, %p685_p9 }
  0x3b   : > { %695 = shalt.err (!%p692_p2)
}
  0x3c   : > { %587 = dma.hbm_to_vmem [thread:$0]  (!%p877_p11), %s1099_s2, 16, %s881_s25, [#allocation6]  }
  0x3d   : > { %s940_s5 = sadd.s32 1, %s796_s15   ;;  %s27_s23 = sadd.s32 1, %s792_s14 }
  0x3e   : > { %s24_s6 = ssub.s32 %s796_s15, %s940_s5  ;;  %p34_p13 = scmp.ne.s32.totalorder %s792_s14, %s788_s13 }
  0x3f   : > { %p25_p6 = scmp.eq.s32.totalorder %s24_s6, 0  ;;  %p35_p10 = scmp.eq.s32.totalorder %s796_s15, 0 }
  0x40   : > { %p1108_p3 = scmp.eq.s32.totalorder %s847_s16, 1  ;;  %p598_p7 = scmp.lt.s32.totalorder %s796_s15, 2 }
  0x41   : > { %s956_s10 = scalar_select %p25_p6, %s792_s14, %s27_s23  }
  0x42   : > { %p950_p5 = por %p1108_p3, %p34_p13  ;;  %p36_p9 = por %p35_p10, %p34_p13 }
  0x43   : > { %s156_s11 = sand.u32 1, %s792_s14   ;;  %s511_s25 = sshll.u32 %s796_s15, 10 }
  0x44   : > { %s1109_s9 = scalar_select %p950_p5, 1, 0 }
  0x45   : > { %s489_s17 = sshll.u32 %s156_s11, 6  ;;  %s963_s26 = scalar_lea.hbm %s1097_s0, %s511_s25 }
  0x46   : > { %s160_s27 = scalar_lea.vmem [#allocation2], %s489_s17  ;;  %p967_p11 = pnand %p598_p7, %p36_p9 }
  0x47   : > { %s167_s28 = sshll.u32 %s160_s27, 4  ;;  %s971_s29 = scalar_lea.sflag [#allocation3], %s156_s11  ;;  %s965_s28 = int_to_ptr.vmem [resolvable:$true] %s167_s28 }
  0x48   : > { %s696_s30 = scalar_lea.hbm %s963_s26, 1024  ;;  %p698_p0 = pneg %p967_p11 }
  0x49   : > { %p697_p12 = scmp.ne.s32.totalorder %s963_s26, %s696_s30  ;;  %s701_s6 = scalar_lea.hbm %s1097_s0, 2048 }
  0x4a   : > { %p702_p13 = scmp.lt.u32.totalorder %s963_s26, %s1097_s0  ;;  %p703_p6 = scmp.lt.u32.totalorder %s701_s6, %s696_s30 }
  0x4b   : > { %p699_p1 = pnand %p698_p0, %p697_p12  ;;  %p705_p3 = scmp.lt.u32.totalorder %s696_s30, %s963_s26 }
  0x4c   : > { %p704_p10 = por %p703_p6, %p702_p13 }
  0x4d   : > { %p700_p2 = pneg %p699_p1 }
  0x4e   : > { %p706_p7 = por %p705_p3, %p704_p10 }
  0x50   : > { %p707_p9 = pnand %p706_p7, %p700_p2 }
  0x52   : > { %710 = shalt.err (!%p707_p9)
}
  0x53   : > { %s711_s11 = scalar_lea.vmem %s965_s28, 1024  ;;  %s802_s21 = smov [#allocation2]  }
  0x54   : > { %p712_p12 = scmp.ne.s32.totalorder %s965_s28, %s711_s11  ;;  %s716_s24 = sshll.u32 %s802_s21, 4  ;;  %s717_s24 = int_to_ptr.vmem [resolvable:$false] %s716_s24 }
  0x55   : > { %s718_s27 = scalar_lea.vmem %s717_s24, 2048  ;;  %p719_p4 = scmp.lt.s32.totalorder %s965_s28, %s717_s24 }
  0x56   : > { %p714_p1 = pnand %p712_p12, %p698_p0  ;;  %p720_p13 = scmp.lt.s32.totalorder %s718_s27, %s711_s11 }
  0x58   : > { %p715_p5 = pneg %p714_p1  ;;  %p721_p6 = por %p720_p13, %p719_p4 }
  0x5a   : > { %p722_p10 = pnand %p721_p6, %p715_p5 }
  0x5c   : > { %725 = shalt.err (!%p722_p10)
}
  0x5d   : > { %591 = dma.hbm_to_vmem [thread:$0]  (!%p967_p11), %s963_s26, 1024, %s965_s28, %s971_s29, %s800_s7, %s800_s7, %s801_s8  }
  0x5e   : > { %179 = sbr.rel (%p866_p8) target bundleno = 354 (0x162), region = 32  ;;  %s1005_s30 = sand.u32 (!%p866_p8), 1, %s788_s13  }
  0x5f   : > { %s493_s4 = sshll.u32 (!%p866_p8), %s1005_s30, 6  ;;  %s182_s23 = scalar_lea.sflag (!%p866_p8), [#allocation3], %s1005_s30 }
  0x60   : > { %s1011_s22 = scalar_lea.vmem (!%p866_p8), [#allocation2], %s493_s4  ;;  %p1111_p4 = scmp.ne.s32.totalorder (!%p866_p8), %s1104_s18, 0 }
  0x65   : > { %771 = dma.done.wait (%p1111_p4), %s182_s23, 1024  }
  0x66   : > { %773 = vsyncadd (%p1111_p4), %s182_s23, 4294966272  ;;  %p1112_p5 = scmp.eq.s32.totalorder %s847_s16, 0 }
  0x68   : > { %775 = dma.done.wait (%p1112_p5), [#allocation6], 784   ;;  %p1113_p8 = pmov %p1112_p5 }
  0x69   : > { %v226_v0 = vld [vmem:[#allocation5] sm:$0xff]  ;;  %v227_v1 = vld [vmem:[#allocation5 + $0x8] sm:$0xff]  ;;  %v228_v2 = vld [vmem:[#allocation5 + $0x10] sm:$0xff]  ;;  %vm239_vm0 = vcmask 392192   ;;  %vm369_vm1 = vcmask 785408   ;;  %s512_s18 = sshll.u32 %s847_s16, 10 }
  0x6a   : > { %777 = vsyncadd (%p1113_p8), [#allocation6], 4294966512  ;;  %v551_v3 = vpack.c.bf16 %v227_v1, %v226_v0  ;;  %v229_v4 = vld [vmem:[#allocation5 + $0x18] sm:$0xff]  ;;  %v230_v6 = vld [vmem:[#allocation5 + $0x20] sm:$0xff]  ;;  %s215_s20 = scalar_lea.vmem [#allocation8], %s493_s4  ;;  %s1047_s26 = scalar_lea.hbm %s1100_s3, %s512_s18 }
  0x6b   : > { %v555_v5 = vpack.c.bf16 %v229_v4, %v228_v2  ;;  %v231_v7 = vld [vmem:[#allocation5 + $0x28] sm:$0xff]  ;;  %v218_v8 = vld [vmem:[%s1011_s22] sm:$0xff]  ;;  %v220_v13 = vld [vmem:[%s1011_s22 + $0x10] sm:$0xff]  ;;  %s392_s7 = sshll.u32 %s215_s20, 4  ;;  %s379_s28 = scalar_lea.sflag [#allocation4], %s1005_s30  ;;  %s1049_s7 = int_to_ptr.vmem [resolvable:$true] %s392_s7 }
  0x6c   : > { %552 = vmatprep.subr.bf16.mxu0 %v551_v3  ;;  %563 = vmatprep.subr.bf16.mxu1 %v551_v3  ;;  %v222_v9 = vld [vmem:[%s1011_s22 + $0x20] sm:$0xff]  ;;  %v559_v10 = vpack.c.bf16 %v231_v7, %v230_v6  ;;  %v219_v11 = vld [vmem:[%s1011_s22 + $0x8] sm:$0xff]  ;;  %v224_v14 = vld [vmem:[%s1011_s22 + $0x30] sm:$0xff]  ;;  %s726_s29 = scalar_lea.vmem %s1049_s7, 1024  ;;  %p1114_p0 = scmp.ne.s32.totalorder %s1109_s9, 0 }
  0x6d   : > { %554 = vmatpush3.bf16.msra.mxu0 %v551_v3  ;;  %566 = vmatpush3.bf16.msra.mxu1 %v551_v3  ;;  %v223_v12 = vld [vmem:[%s1011_s22 + $0x28] sm:$0xff]  ;;  %v221_v15 = vld [vmem:[%s1011_s22 + $0x18] sm:$0xff]  ;;  %v497_v17 = vld [vmem:[#allocation7] ss:$0 sm:$0xff]  ;;  %p727_p11 = scmp.ne.s32.totalorder %s1049_s7, %s726_s29  ;;  %s803_s6 = smov [#allocation8]  }
  0x6e   : > { %556 = vmatprep.subr.bf16.mxu0 %v555_v5  ;;  %564 = vmatprep.subr.bf16.mxu1 %v555_v5  ;;  %v225_v16 = vld [vmem:[%s1011_s22 + $0x38] sm:$0xff]  ;;  %s730_s17 = sshll.u32 %s803_s6, 4  ;;  %s731_s17 = int_to_ptr.vmem [resolvable:$false] %s730_s17 }
  0x6f   : > { %539 = vmatprep.mubr.msk.f32.mxu0 %vm239_vm0, %v218_v8  ;;  %545 = vmatprep.mubr.msk.f32.mxu1 %vm239_vm0, %v222_v9  ;;  %p728_p2 = pnand %p727_p11, %p1114_p0  ;;  %s732_s25 = scalar_lea.vmem %s731_s17, 2048 }
  0x70   : > { %p733_p7 = scmp.lt.s32.totalorder %s1049_s7, %s731_s17  ;;  %p734_p9 = scmp.lt.s32.totalorder %s732_s25, %s726_s29 }
  0x71   : > { %558 = vmatpush3.bf16.msra.mxu0 %v555_v5  ;;  %567 = vmatpush3.bf16.msra.mxu1 %v555_v5  ;;  %p729_p3 = pneg %p728_p2 }
  0x72   : > { %560 = vmatprep.subr.bf16.mxu0 %v559_v10  ;;  %565 = vmatprep.subr.bf16.mxu1 %v559_v10  ;;  %p735_p12 = por %p734_p9, %p733_p7 }
  0x74   : > { %p736_p1 = pnand %p735_p12, %p729_p3 }
  0x75   : > { %562 = vmatpush3.bf16.msra.mxu0 %v559_v10  ;;  %568 = vmatpush3.bf16.msra.mxu1 %v559_v10 }
  0x78   : > { %540 = vmatmul.mubr.msk.f32.vlgmr.msra.gmra.mrb[0].mxu0 %vm239_vm0, %v219_v11  ;;  %546 = vmatmul.mubr.msk.f32.vlgmr.msra.gmra.mrb[0].mxu1 %vm239_vm0, %v223_v12 }
  0x79   : > { %542 = vmatprep.mubr.msk.f32.mxu0 %vm239_vm0, %v220_v13  ;;  %548 = vmatprep.mubr.msk.f32.mxu1 %vm239_vm0, %v224_v14 }
  0x7c   : > { %543 = vmatmul.mubr.msk.f32.gmra.mrb[2].mxu0 %vm239_vm0, %v221_v15  ;;  %549 = vmatmul.mubr.msk.f32.gmra.mrb[2].mxu1 %vm239_vm0, %v225_v16 }
 0x14b   : > { %v541_v18 = vpop.f32.mrb[0].mxu0  ;;  %v547_v19 = vpop.f32.mrb[0].mxu1 }
 0x14c   : > { %v336_v20 = vadd.f32 %v541_v18, %v497_v17  ;;  %v356_v21 = vadd.f32 %v547_v19, %v497_v17  ;;  %v330_v22 = vpop.f32.mrb[1].mxu0  ;;  %v350_v23 = vpop.f32.mrb[1].mxu1 }
 0x14d   : > { %v331_v24 = vadd.f32 %v497_v17, %v330_v22  ;;  %v351_v25 = vadd.f32 %v497_v17, %v350_v23 }
 0x14e   : > { %371 = vst.msk [vmem:[%s215_s20 + $0x8] sm:$0xff] %vm369_vm1, %v336_v20  ;;  %375 = vst.msk [vmem:[%s215_s20 + $0x28] sm:$0xff] %vm369_vm1, %v356_v21 }
 0x14f   : > { %370 = vst.msk [vmem:[%s215_s20] sm:$0xff] %vm369_vm1, %v331_v24  ;;  %374 = vst.msk [vmem:[%s215_s20 + $0x20] sm:$0xff] %vm369_vm1, %v351_v25  ;;  %v544_v26 = vpop.f32.mrb[2].mxu0  ;;  %v550_v27 = vpop.f32.mrb[2].mxu1 }
 0x150   : > { %v346_v28 = vadd.f32 %v544_v26, %v497_v17  ;;  %v366_v29 = vadd.f32 %v550_v27, %v497_v17  ;;  %v340_v30 = vpop.f32.mrb[3].mxu0  ;;  %v360_v31 = vpop.f32.mrb[3].mxu1 }
 0x151   : > { %v341_v32 = vadd.f32 %v497_v17, %v340_v30  ;;  %v361_v33 = vadd.f32 %v497_v17, %v360_v31 }
 0x152   : > { %373 = vst.msk [vmem:[%s215_s20 + $0x18] sm:$0xff] %vm369_vm1, %v346_v28  ;;  %377 = vst.msk [vmem:[%s215_s20 + $0x38] sm:$0xff] %vm369_vm1, %v366_v29 }
 0x153   : > { %372 = vst.msk [vmem:[%s215_s20 + $0x10] sm:$0xff] %vm369_vm1, %v341_v32  ;;  %376 = vst.msk [vmem:[%s215_s20 + $0x30] sm:$0xff] %vm369_vm1, %v361_v33 }
 0x154   : > { %739 = shalt.err (!%p736_p1)
}
 0x155   : > { %s740_s11 = scalar_lea.hbm %s1047_s26, 1024  ;;  %s744_s27 = scalar_lea.hbm %s1100_s3, 2048 }
 0x156   : > { %p741_p13 = scmp.ne.s32.totalorder %s1047_s26, %s740_s11  ;;  %p745_p4 = scmp.lt.u32.totalorder %s1047_s26, %s1100_s3 }
 0x157   : > { %p746_p5 = scmp.lt.u32.totalorder %s744_s27, %s740_s11  ;;  %p748_p11 = scmp.lt.u32.totalorder %s740_s11, %s1047_s26 }
 0x158   : > { %p742_p6 = pnand %p741_p13, %p1114_p0 }
 0x159   : > { %p747_p8 = por %p746_p5, %p745_p4 }
 0x15a   : > { %p743_p10 = pneg %p742_p6 }
 0x15b   : > { %p749_p2 = por %p748_p11, %p747_p8 }
 0x15d   : > { %p750_p3 = pnand %p749_p2, %p743_p10 }
 0x15f   : > { %753 = shalt.err (!%p750_p3)
}
 0x160   : > { %s804_s22 = smov 128   ;;  %s805_s18 = smov 8  }
 0x161   : > { %579 = dma.vmem_to_hbm [thread:$0]  (%p1114_p0), %s1049_s7, 1024, %s1047_s26, %s379_s28, %s804_s22, %s804_s22, %s805_s18  }
 0x162 PF: > { %s407_s20 = sand.u32 1, %s784_s12   ;;  %p1115_p7 = scmp.ne.s32.totalorder %s1105_s19, 0 }
 0x163   : > { %p1116_p9 = scmp.ge.s32.totalorder %s796_s15, 2  ;;  %s408_s16 = scalar_lea.sflag [#allocation4], %s407_s20 }
 0x165   : > { %p593_p12 = pnand %p1116_p9, %p1115_p7 }
 0x167   : > { %779 = dma.done.wait (!%p593_p12), %s408_s16, 1024  }
 0x168   : > { %781 = vsyncadd (!%p593_p12), %s408_s16, 4294966272  ;;  %p17_p1 = scmp.ge.s32.totalorder %s940_s5, 4   ;;  %s1117_s12 = smov %s788_s13 }
 0x169   : > { %s1118_s13 = smov %s792_s14  ;;  %s1119_s14 = smov %s956_s10 }
 0x16a   : > { %s1120_s15 = smov %s940_s5  ;;  %19 = sbr.rel (!%p17_p1) target bundleno = 6 (0x6), region = 85 }
 0x171   :  { %413 = vsyncpa [#allocation3], 1 }
 0x172   :  { %415 = vsyncpa [#allocation3 + $0x1], 1 }
 0x173   :  { %416 = vsyncpa [#allocation6], 1 }
 0x174   :  { %417 = vsyncpa [#allocation4], 1 }
 0x175   :  { %419 = vsyncpa [#allocation4 + $0x1], 1 }

</bundles_post_ra>
